<compile_context>
chip_gen: v7x
topology: tpu7x:2x2x1
jax: 0.10.0
libtpu: 0.0.40
codegen_flags: <defaults>
</compile_context>

<pallas_src>
import math

import jax
import jax.numpy as jnp
from jax.experimental import pallas as pl
from jax.experimental.pallas import tpu as pltpu

_LANES = 128
# Per-input tile byte budget.  BlockSpec double-buffers both x and out, so the
# peak pipelined footprint is ~4x this (+ tiny resident weight/bias): ~12 MiB,
# which leaves headroom under v5e's 16 MiB scoped-VMEM default and is far
# inside v6e/v7x's 32 MiB defaults.
_MAX_TILE_BYTES = 3 << 20
# Keep >=4 grid steps on large inputs so read and write DMAs overlap, and so
# v7x's two TensorCores (which split the "parallel" axis) each get >=2 steps.
_TARGET_STEPS = 4
# Below this total size a fused XLA elementwise op beats a pallas_call launch.
_SMALL_BYPASS_BYTES = 512 << 10


def _sublane_multiple(dtype):
    """Sublane packing multiple: 8 for 4-byte, 16 for 2-byte, 32 for 1-byte."""
    return max(8, 32 // jnp.dtype(dtype).itemsize)


def _bn_kernel(x_ref, w_ref, b_ref, o_ref):
    # Elementwise scale + shift on the VPU; the (1, C) rows sublane-broadcast
    # against the (TB, C) tile.  No per-step reshapes/tiles in the body.
    o_ref[...] = x_ref[...] * w_ref[...] + b_ref[...]


def _choose_row_tile(rows, cols, itemsize, sub):
    """Row tile: byte-budget bound, >=_TARGET_STEPS steps, sublane-aligned."""
    budget_rows = (_MAX_TILE_BYTES // max(1, cols * itemsize)) // sub * sub
    budget_rows = max(sub, budget_rows)  # very wide F: accept one 8-row strip
    target = pl.cdiv(rows, _TARGET_STEPS)
    target = pl.cdiv(target, sub) * sub
    tile = max(sub, min(budget_rows, target))
    if rows <= tile:
        return rows  # single full-extent block (legal for any row count)
    return tile


def _bn_pallas(x2, w2, b2, row_tile):
    rows, cols = x2.shape
    # Ragged last block is fine: OOB reads are unspecified (elementwise, never
    # observed) and OOB writes are masked -- no wrapper-side padding needed.
    grid = (pl.cdiv(rows, row_tile),)
    return pl.pallas_call(
        _bn_kernel,
        out_shape=jax.ShapeDtypeStruct((rows, cols), x2.dtype),
        grid_spec=pltpu.PrefetchScalarGridSpec(
            num_scalar_prefetch=0,
            grid=grid,
            in_specs=[
                pl.BlockSpec((row_tile, cols), lambda i: (i, 0)),
                pl.BlockSpec((1, cols), lambda i: (0, 0)),   # resident weight
                pl.BlockSpec((1, cols), lambda i: (0, 0)),   # resident bias
            ],
            out_specs=pl.BlockSpec((row_tile, cols), lambda i: (i, 0)),
        ),
        compiler_params=pltpu.CompilerParams(
            dimension_semantics=("parallel",),   # shard rows across v7x's 2 TCs
        ),
    )(x2, w2, b2)


def bn_layer_forward(x, weight, bias, *, force_pallas=False):
    """x: (..., F); weight, bias: (F,).  Returns x * weight + bias."""
    orig_shape = x.shape
    F = orig_shape[-1]
    x2d = x.reshape(-1, F)
    B = x2d.shape[0]
    itemsize = jnp.dtype(x.dtype).itemsize

    # Tiny inputs: a pallas_call launch costs several us; let XLA fuse instead.
    if not force_pallas and B * F * itemsize < _SMALL_BYPASS_BYTES:
        out = x2d * weight[None, :] + bias[None, :]
        return out.reshape(orig_shape)

    sub = _sublane_multiple(x.dtype)

    if F < _LANES and _LANES % F == 0 and (B * F) % _LANES == 0:
        # Lane-packing: fold k feature rows into one 128-wide vreg row so every
        # vld/vst is lane-dense (unmasked).
        k = _LANES // F
        rows, cols = B // k, _LANES
        x2 = x2d.reshape(rows, cols)
        w2 = jnp.tile(weight, k).reshape(1, cols)
        b2 = jnp.tile(bias, k).reshape(1, cols)
        packed = True
    else:
        # Keep the feature axis as a full-extent block (legal for any F); a
        # masked store tail is far cheaper than an extra HBM pad/slice pass.
        # TODO(synk): for extremely wide F a 2D (row, col) grid would bound the
        # tile size better than the single 8-row strip fallback.
        rows, cols = B, F
        x2 = x2d
        w2 = weight.reshape(1, cols)
        b2 = bias.reshape(1, cols)
        packed = False

    row_tile = _choose_row_tile(rows, cols, itemsize, sub)
    out2 = _bn_pallas(x2, w2, b2, row_tile)

    if packed:
        out2 = out2.reshape(B, F)
    return out2.reshape(orig_shape)


if __name__ == "__main__":
    feature_size = 32
    batch = 8

    key = jax.random.PRNGKey(0)
    kx, kw, kb, kx_big, kx_rag = jax.random.split(key, 5)

    # Deterministic parameter init mirroring create_Param:
    #   normal(mean=0, std=1/sqrt(feature_size))
    std = 1.0 / math.sqrt(feature_size)
    weight = std * jax.random.normal(kw, (feature_size,), dtype=jnp.float32)
    bias = std * jax.random.normal(kb, (feature_size,), dtype=jnp.float32)

    # Small case matching the module spec shapes; force the Pallas path so the
    # kernel itself is exercised (the natural path would bypass to fused XLA).
    x = jax.random.normal(kx, (batch, feature_size), dtype=jnp.float32)
    out = jax.block_until_ready(bn_layer_forward(x, weight, bias, force_pallas=True))
    ref = x * weight[None, :] + bias[None, :]
    assert out.shape == (batch, feature_size)
    assert jnp.allclose(out, ref, atol=1e-6, rtol=1e-6)

    # Larger case: lane-packed, multi-step pipelined grid (packed rows 2048,
    # row_tile 512 -> grid (4,)).
    big_batch = 8192
    xb = jax.random.normal(kx_big, (big_batch, feature_size), dtype=jnp.float32)
    outb = jax.block_until_ready(bn_layer_forward(xb, weight, bias))
    refb = xb * weight[None, :] + bias[None, :]
    assert outb.shape == (big_batch, feature_size)
    assert jnp.allclose(outb, refb, atol=1e-6, rtol=1e-6)

    # Ragged case: grid with a partial last block, no wrapper-side pad/slice
    # (packed rows 1500, row_tile 376 -> grid (4,), masked tail stores).
    rag_batch = 6000
    xr = jax.random.normal(kx_rag, (rag_batch, feature_size), dtype=jnp.float32)
    outr = jax.block_until_ready(bn_layer_forward(xr, weight, bias))
    refr = xr * weight[None, :] + bias[None, :]
    assert outr.shape == (rag_batch, feature_size)
    assert jnp.allclose(outr, refr, atol=1e-6, rtol=1e-6)

    print("KERNEL_OK")
</pallas_src>

<mosaic_0001>
module attributes {stable_mosaic.version = 11 : i64} {
  func.func @_bn_kernel(%arg0: i32, %arg1: memref<2x128xf32, #tpu.memory_space<vmem>>, %arg2: memref<1x128xf32, #tpu.memory_space<vmem>>, %arg3: memref<1x128xf32, #tpu.memory_space<vmem>>, %arg4: memref<2x128xf32, #tpu.memory_space<vmem>>) attributes {dimension_semantics = [#tpu.dimension_semantics<parallel>], iteration_bounds = array<i64: 1>, scalar_prefetch = 0 : i64, scratch_operands = 0 : i64, tpu.core_type = #tpu.core_type<tc>, window_params = [{transform_indices = @transform_0, window_bounds = array<i64: 2, 128>}, {pipeline_mode = #tpu.pipeline_mode<synchronous>, transform_indices = @transform_1, window_bounds = array<i64: 1, 128>}, {pipeline_mode = #tpu.pipeline_mode<synchronous>, transform_indices = @transform_2, window_bounds = array<i64: 1, 128>}, {transform_indices = @transform_3, window_bounds = array<i64: 2, 128>}]} {
    %c0 = arith.constant 0 : index
    %c0_0 = arith.constant 0 : index
    %0 = vector.load %arg1[%c0, %c0_0] : memref<2x128xf32, #tpu.memory_space<vmem>>, vector<2x128xf32>
    %c0_1 = arith.constant 0 : index
    %c0_2 = arith.constant 0 : index
    %1 = vector.load %arg2[%c0_1, %c0_2] : memref<1x128xf32, #tpu.memory_space<vmem>>, vector<1x128xf32>
    %2 = vector.broadcast %1 : vector<1x128xf32> to vector<2x128xf32>
    %3 = arith.mulf %0, %2 : vector<2x128xf32>
    %c0_3 = arith.constant 0 : index
    %c0_4 = arith.constant 0 : index
    %4 = vector.load %arg3[%c0_3, %c0_4] : memref<1x128xf32, #tpu.memory_space<vmem>>, vector<1x128xf32>
    %5 = vector.broadcast %4 : vector<1x128xf32> to vector<2x128xf32>
    %6 = arith.addf %3, %5 : vector<2x128xf32>
    %c0_5 = arith.constant 0 : index
    %c0_6 = arith.constant 0 : index
    %7 = vector.load %arg4[%c0_5, %c0_6] : memref<2x128xf32, #tpu.memory_space<vmem>>, vector<2x128xf32>
    tpu.vector_store %arg4[%c0_5, %c0_6], %6 {strides = array<i32>} : memref<2x128xf32, #tpu.memory_space<vmem>>, vector<2x128xf32>,
    return
  }
  func.func @transform_0(%arg0: i32) -> (i32, i32) {
    %c0_i32 = arith.constant 0 : i32
    %c0_i32_0 = arith.constant 0 : i32
    return %arg0, %c0_i32 : i32, i32
  }
  func.func @transform_1(%arg0: i32) -> (i32, i32) {
    %c0_i32 = arith.constant 0 : i32
    %c0_i32_0 = arith.constant 0 : i32
    %c0_i32_1 = arith.constant 0 : i32
    return %c0_i32, %c0_i32_0 : i32, i32
  }
  func.func @transform_2(%arg0: i32) -> (i32, i32) {
    %c0_i32 = arith.constant 0 : i32
    %c0_i32_0 = arith.constant 0 : i32
    %c0_i32_1 = arith.constant 0 : i32
    return %c0_i32, %c0_i32_0 : i32, i32
  }
  func.func @transform_3(%arg0: i32) -> (i32, i32) {
    %c0_i32 = arith.constant 0 : i32
    %c0_i32_0 = arith.constant 0 : i32
    return %arg0, %c0_i32 : i32, i32
  }
}

</mosaic_0001>

<bundles_post_ra>
// kernel: tpu_custom_call.1
= control target key start
LH: loop header
LB: loop body
LE: loop exit
PB: predicated region body
PF: predicated region fallthrough
CT: control target
= control target key end

     0   :  { %8 = vsyncpa [#allocation3], 0  ;;  %s164_s0 = inlined_call_operand.hbm [shape: f32[2,128], index: 0, kind: input, shape index: {}]   ;;  %s165_s1 = inlined_call_operand.vmem [shape: f32[1,128], index: 1, kind: input, shape index: {}]   ;;  %s166_s2 = inlined_call_operand.vmem [shape: f32[1,128], index: 2, kind: input, shape index: {}]   ;;  %s167_s3 = inlined_call_operand.hbm [shape: f32[2,128], index: 3, kind: output, shape index: {}]  }
   0x1   :  { %9 = vsyncpa [#allocation4], 0  ;;  %s112_s12 = smov [#allocation2]   ;;  %s64_s16 = scalar_lea.hbm %s164_s0, 32 }
   0x2   :  { %s16_s13 = sshll.u32 %s112_s12, 4  ;;  %p65_p0 = scmp.ne.s32.totalorder %s164_s0, %s64_s16  ;;  %s17_s13 = int_to_ptr.vmem [resolvable:$true] %s16_s13 }
   0x3   :  { %p68_p1 = scmp.lt.u32.totalorder %s64_s16, %s164_s0 }
   0x5   :  { %p70_p2 = pnand %p68_p1, %p65_p0 }
   0x7   :  { %73 = shalt.err (!%p70_p2)
}
   0x8   :  { %s74_s21 = scalar_lea.vmem %s17_s13, 32  ;;  %p79_p4 = scmp.lt.s32.totalorder %s17_s13, %s17_s13 }
   0x9   :  { %p75_p3 = scmp.ne.s32.totalorder %s17_s13, %s74_s21  ;;  %p80_p5 = scmp.lt.s32.totalorder %s74_s21, %s74_s21 }
   0xb   :  { %p81_p6 = por %p80_p5, %p79_p4 }
   0xd   :  { %p82_p7 = pnand %p81_p6, %p75_p3 }
   0xf   :  { %85 = shalt.err (!%p82_p7)
}
  0x10   :  { %19 = dma.hbm_to_vmem [thread:$0]  %s164_s0, 32, %s17_s13, [#allocation3]  }
  0x11   :  { %108 = dma.done.wait [#allocation3], 32  }
  0x12   :  { %109 = vsyncadd [#allocation3], 4294967264  ;;  %s113_s24 = smov [#allocation5]   ;;  %v27_v0 = vld [vmem:[#allocation2] sm:$0x3] }
  0x13   :  { %s51_s25 = sshll.u32 %s113_s24, 4  ;;  %v60_v1 = vld [vmem:[%s165_s1] ss:$0 sm:$0xff]  ;;  %s52_s25 = int_to_ptr.vmem [resolvable:$true] %s51_s25 }
  0x14   :  { %v61_v2 = vld [vmem:[%s166_s2] ss:$0 sm:$0xff]  ;;  %v35_v3 = vmul.f32 %v60_v1, %v27_v0  ;;  %s86_s30 = scalar_lea.vmem %s52_s25, 32  ;;  %p91_p9 = scmp.lt.s32.totalorder %s52_s25, %s52_s25 }
  0x15   :  { %p87_p8 = scmp.ne.s32.totalorder %s52_s25, %s86_s30  ;;  %p92_p10 = scmp.lt.s32.totalorder %s86_s30, %s86_s30 }
  0x16   :  { %v43_v4 = vadd.f32 %v61_v2, %v35_v3 }
  0x17   :  { %p93_p11 = por %p92_p10, %p91_p9 }
  0x18   :  { %44 = vst [vmem:[#allocation5] sm:$0x3] %v43_v4 }
  0x19   :  { %p94_p12 = pnand %p93_p11, %p87_p8 }
  0x1b   :  { %97 = shalt.err (!%p94_p12)
}
  0x1c   :  { %s98_s5 = scalar_lea.hbm %s167_s3, 32 }
  0x1d   :  { %p99_p13 = scmp.ne.s32.totalorder %s167_s3, %s98_s5  ;;  %p102_p0 = scmp.lt.u32.totalorder %s98_s5, %s167_s3 }
  0x1f   :  { %p104_p1 = pnand %p102_p0, %p99_p13 }
  0x21   :  { %107 = shalt.err (!%p104_p1)
}
  0x22   :  { %54 = dma.vmem_to_hbm [thread:$0]  %s52_s25, 32, %s167_s3, [#allocation4]  }
  0x23   :  { %110 = dma.done.wait [#allocation4], 32  }
  0x24   :  { %111 = vsyncadd [#allocation4], 4294967264 }
  0x25   :  { %58 = vsyncpa [#allocation3], 1 }
  0x26   :  { %59 = vsyncpa [#allocation4], 1 }

</bundles_post_ra>
